<compile_context>
chip_gen: v7x
topology: tpu7x:2x2x1
jax: 0.10.0
libtpu: 0.0.40
codegen_flags: <defaults>
</compile_context>

<pallas_src>
import jax
import jax.numpy as jnp
from jax.experimental import pallas as pl
from jax.experimental.pallas import tpu as pltpu


def _round_up(x, m):
    return (x + m - 1) // m * m


def _num_tensorcores():
    """Best-effort TensorCore count (v7x has 2); default to 1 if unknown."""
    try:
        info = pltpu.get_tpu_info()
        for attr in ("num_cores", "tensor_cores_per_chip", "core_count",
                     "num_tensorcores"):
            v = getattr(info, attr, None)
            if isinstance(v, int) and v > 0:
                return v
    except Exception:
        pass
    return 1


# ---------------------------------------------------------------------------
# Pallas kernels
# ---------------------------------------------------------------------------
def _gemm_kernel_single_k(x_ref, w_ref, o_ref):
    # Whole K fits one block: dot straight into the output tile, no scratch.
    o_ref[...] = jnp.dot(x_ref[...], w_ref[...],
                         preferred_element_type=jnp.float32).astype(o_ref.dtype)


def _gemm_kernel_multi_k(x_ref, w_ref, o_ref, acc_ref):
    @pl.when(pl.program_id(2) == 0)
    def _():
        acc_ref[...] = jnp.zeros_like(acc_ref)

    acc_ref[...] += jnp.dot(x_ref[...], w_ref[...],
                            preferred_element_type=jnp.float32)

    @pl.when(pl.program_id(2) == pl.num_programs(2) - 1)
    def _():
        o_ref[...] = acc_ref[...].astype(o_ref.dtype)


def matmul_bf16(x, w):
    """out = x @ w.  x:(M,K) bf16, w:(K,N) bf16 -> (M,N) bf16 (f32 accumulate)."""
    M, K = x.shape
    Kw, Nc = w.shape
    assert K == Kw
    assert x.dtype == jnp.bfloat16 and w.dtype == jnp.bfloat16

    # ---- tile selection: big collapsed tiles, bf16 operands ----------------
    Kp = _round_up(K, 128)
    Np = _round_up(Nc, 128)
    TK = Kp if Kp <= 1024 else 512
    TN = Np if Np <= 1024 else 512
    Kp = _round_up(Kp, TK)
    Np = _round_up(Np, TN)

    Mp = _round_up(M, 128)
    TM = min(512, Mp)
    # Split M only when there are >=2 TensorCores to feed (v7x); on
    # single-core v5e/v6e the split just doubles grid-step overhead.
    if _num_tensorcores() >= 2 and Mp > 128 and Mp // TM < 2:
        TM = max(128, _round_up(Mp // 2, 128))
    Mp = _round_up(Mp, TM)

    xp = x if (Mp == M and Kp == K) else jnp.pad(x, ((0, Mp - M), (0, Kp - K)))
    wp = w if (Kp == K and Np == Nc) else jnp.pad(w, ((0, Kp - K), (0, Np - Nc)))

    nk = Kp // TK
    if nk == 1:
        out = pl.pallas_call(
            _gemm_kernel_single_k,
            out_shape=jax.ShapeDtypeStruct((Mp, Np), jnp.bfloat16),
            grid_spec=pltpu.PrefetchScalarGridSpec(
                num_scalar_prefetch=0,
                grid=(Mp // TM, Np // TN),
                in_specs=[
                    pl.BlockSpec((TM, TK), lambda i, j: (i, 0)),
                    pl.BlockSpec((TK, TN), lambda i, j: (0, j)),
                ],
                out_specs=pl.BlockSpec((TM, TN), lambda i, j: (i, j)),
            ),
            compiler_params=pltpu.CompilerParams(
                dimension_semantics=("parallel", "parallel")),
        )(xp, wp)
    else:
        out = pl.pallas_call(
            _gemm_kernel_multi_k,
            out_shape=jax.ShapeDtypeStruct((Mp, Np), jnp.bfloat16),
            grid_spec=pltpu.PrefetchScalarGridSpec(
                num_scalar_prefetch=0,
                grid=(Mp // TM, Np // TN, nk),
                in_specs=[
                    pl.BlockSpec((TM, TK), lambda i, j, k: (i, k)),
                    pl.BlockSpec((TK, TN), lambda i, j, k: (k, j)),
                ],
                out_specs=pl.BlockSpec((TM, TN), lambda i, j, k: (i, j)),
                scratch_shapes=[pltpu.VMEM((TM, TN), jnp.float32)],
            ),
            compiler_params=pltpu.CompilerParams(
                dimension_semantics=("parallel", "parallel", "arbitrary")),
        )(xp, wp)
    if Mp != M or Np != Nc:
        out = out[:M, :Nc]
    return out


def _inorm_relu_gemm_layout_kernel(x_ref, o_ref):
    """InstanceNorm2d(affine=False, eps=1e-5) + ReLU on a (1, H*W, 4*OC) tile.

    Column layout is [parity(0,0) | parity(0,1) | parity(1,0) | parity(1,1)]
    x OC channels, so per-(n,c) stats are the row sum plus the sum of the four
    OC-wide lane groups.  One-pass E[x^2] - mean^2 form: no centered temporary.
    """
    x = x_ref[...].astype(jnp.float32)                       # (1, HW, 4*OC)
    hw = x.shape[1]
    oc = x.shape[2] // 4
    inv_n = 1.0 / (4.0 * hw)

    s = jnp.sum(x, axis=1)                                   # (1, 4*OC)
    ss = jnp.sum(x * x, axis=1)                              # (1, 4*OC)
    s = s[:, 0:oc] + s[:, oc:2 * oc] + s[:, 2 * oc:3 * oc] + s[:, 3 * oc:4 * oc]
    ss = ss[:, 0:oc] + ss[:, oc:2 * oc] + ss[:, 2 * oc:3 * oc] + ss[:, 3 * oc:4 * oc]

    mean = s * inv_n                                         # (1, OC)
    var = ss * inv_n - mean * mean
    inv_std = jax.lax.rsqrt(var + 1e-5)

    scale = jnp.concatenate([inv_std] * 4, axis=-1)          # (1, 4*OC)
    shift = jnp.concatenate([mean * inv_std] * 4, axis=-1)
    y = jnp.maximum(x * scale[:, None, :] - shift[:, None, :], 0.0)
    o_ref[...] = y.astype(o_ref.dtype)


def instance_norm_relu_gemm_layout(x_nsq):
    """x_nsq: (N, H*W, 4*OC) bf16 -> same shape/dtype, InstanceNorm+ReLU."""
    N, S, Q = x_nsq.shape
    # TODO(synk): for very large decoder shapes, tile S (two-pass stats) so a
    #             single (S, Q) block stays inside v7x's 64 MiB VMEM.
    return pl.pallas_call(
        _inorm_relu_gemm_layout_kernel,
        out_shape=jax.ShapeDtypeStruct((N, S, Q), x_nsq.dtype),
        grid=(N,),
        in_specs=[pl.BlockSpec((1, S, Q), lambda n: (n, 0, 0))],
        out_specs=pl.BlockSpec((1, S, Q), lambda n: (n, 0, 0)),
        compiler_params=pltpu.CompilerParams(dimension_semantics=("parallel",)),
    )(x_nsq)


# ---------------------------------------------------------------------------
# Weight packing (done once, outside the traced forward)
# ---------------------------------------------------------------------------
def pack_params(w_ct, bias=None):
    """ConvTranspose2d(3, s=2, p=1, output_padding=1) -> one GEMM-ready weight.

    Sub-filter (pixel-shuffle) decomposition: with 2x dilation each output
    parity class (py, px) only receives taps x[h+ty, w+tx] (ty, tx in {0,1}) of
    the *undilated* input, so the transposed conv is one
    (N*H*W, 4*IC) @ (4*IC, 4*OC) GEMM plus a pixel shuffle.
    The bias is discarded: InstanceNorm2d(affine=False) mean subtraction
    absorbs any per-channel constant and the variance is unchanged.
    """
    del bias
    IC, OC, KH, KW = w_ct.shape
    assert KH == 3 and KW == 3, "only kernel_size=3 supported"
    wf = lambda dy, dx: w_ct[:, :, 2 - dy, 2 - dx]            # (IC, OC)
    z = jnp.zeros((IC, OC), w_ct.dtype)
    # rows: input taps t=(ty,tx);  cols: output parity classes c=(py,px)
    w_big = jnp.block([
        [wf(1, 1), wf(1, 0), wf(0, 1), wf(0, 0)],   # tap (0, 0)
        [z,        wf(1, 2), z,        wf(0, 2)],   # tap (0, 1)
        [z,        z,        wf(2, 1), wf(2, 0)],   # tap (1, 0)
        [z,        z,        z,        wf(2, 2)],   # tap (1, 1)
    ])                                              # (4*IC, 4*OC)
    return {"w_gemm": w_big.astype(jnp.bfloat16)}


# ---------------------------------------------------------------------------
# Forward pass (PyTorch interface layout: NCHW in, NCHW out)
# ---------------------------------------------------------------------------
def conv2d_transpose_block_forward(params, x_nchw):
    w_gemm = params["w_gemm"]                       # (4*IC, 4*OC) bf16
    OC = w_gemm.shape[1] // 4                       # static: derived from shape
    N, IC, H, W = x_nchw.shape

    # NCHW -> NHWC, straight to bf16 (MXU operand dtype; halves HBM bytes).
    x = jnp.transpose(x_nchw, (0, 2, 3, 1)).astype(jnp.bfloat16)

    # 2x2 'im2col' of the undilated input (zero pad bottom/right by one).
    # TODO(synk): medium effort - form the 4 taps inside the GEMM kernel from a
    #             halo tile instead of materializing the 4x patch matrix in HBM.
    xp = jnp.pad(x, ((0, 0), (0, 1), (0, 1), (0, 0)))
    taps = [xp[:, ty:ty + H, tx:tx + W, :] for ty in (0, 1) for tx in (0, 1)]
    patches = jnp.concatenate(taps, axis=-1).reshape(N * H * W, 4 * IC)

    # GEMM, bf16 intermediate; no bias (cancelled by InstanceNorm).
    y = matmul_bf16(patches, w_gemm)                # (N*H*W, 4*OC) bf16

    # InstanceNorm + ReLU directly on the GEMM layout (no pre-norm transposes).
    y = instance_norm_relu_gemm_layout(y.reshape(N, H * W, 4 * OC))

    # Single pixel-shuffle / NCHW re-layout pass, producing the f32 output.
    y = y.reshape(N, H, W, 2, 2, OC)                # (n, h, w, py, px, c)
    y = jnp.transpose(y, (0, 5, 1, 3, 2, 4)).astype(jnp.float32)
    return y.reshape(N, OC, 2 * H, 2 * W)


# ---------------------------------------------------------------------------
# Pure-JAX reference (dilate + pad + conv formulation) for correctness check
# ---------------------------------------------------------------------------
def reference_forward(w_ct, bias, x_nchw):
    x = jnp.transpose(x_nchw, (0, 2, 3, 1)).astype(jnp.float32)
    N, H, W, C = x.shape
    IC, OC, KH, KW = w_ct.shape
    xd = jnp.zeros((N, 2 * H - 1, 2 * W - 1, C), jnp.float32).at[:, ::2, ::2, :].set(x)
    xpad = jnp.pad(xd, ((0, 0), (1, 2), (1, 2), (0, 0)))
    wfwd = jnp.transpose(w_ct[:, :, ::-1, ::-1], (2, 3, 0, 1))     # (KH, KW, IC, OC)
    y = jax.lax.conv_general_dilated(
        xpad, wfwd, window_strides=(1, 1), padding="VALID",
        dimension_numbers=("NHWC", "HWIO", "NHWC"),
        precision=jax.lax.Precision.HIGHEST) + bias
    mean = y.mean(axis=(1, 2), keepdims=True)
    var = jnp.mean(jnp.square(y - mean), axis=(1, 2), keepdims=True)
    y = jnp.maximum((y - mean) * jax.lax.rsqrt(var + 1e-5), 0.0)
    return jnp.transpose(y, (0, 3, 1, 2))


if __name__ == "__main__":
    key = jax.random.PRNGKey(0)
    kw, kb, kx = jax.random.split(key, 3)

    batch, in_c, out_c, hw = 2, 32, 32, 16          # small but MXU/lane friendly
    fan_in = in_c * 3 * 3
    w_ct = jax.random.normal(kw, (in_c, out_c, 3, 3), jnp.float32) * jnp.sqrt(2.0 / fan_in)
    bias = jax.random.normal(kb, (out_c,), jnp.float32) * 0.01
    x = jax.random.normal(kx, (batch, in_c, hw, hw), jnp.float32)  # NCHW like PyTorch

    params = pack_params(w_ct, bias)
    fwd = jax.jit(conv2d_transpose_block_forward)
    y = jax.block_until_ready(fwd(params, x))

    assert y.shape == (batch, out_c, 2 * hw, 2 * hw), y.shape
    assert bool(jnp.all(jnp.isfinite(y)))
    assert bool(jnp.all(y >= 0.0))                  # ReLU output

    y_ref = reference_forward(w_ct, bias, x)
    max_err = float(jnp.max(jnp.abs(y - y_ref)))
    # bf16 MXU operands + bf16 intermediate -> relaxed tolerance vs f32 reference
    assert max_err < 0.1, f"max abs err vs reference: {max_err}"

    print("KERNEL_OK")
</pallas_src>

<mosaic_0001>
module attributes {stable_mosaic.version = 11 : i64} {
  func.func @_gemm_kernel_single_k(%arg0: i32, %arg1: i32, %arg2: memref<512x128xbf16, #tpu.memory_space<vmem>>, %arg3: memref<128x128xbf16, #tpu.memory_space<vmem>>, %arg4: memref<512x128xbf16, #tpu.memory_space<vmem>>) attributes {dimension_semantics = [#tpu.dimension_semantics<parallel>, #tpu.dimension_semantics<parallel>], iteration_bounds = array<i64: 1, 1>, scalar_prefetch = 0 : i64, scratch_operands = 0 : i64, tpu.core_type = #tpu.core_type<tc>, window_params = [{transform_indices = @transform_0, window_bounds = array<i64: 512, 128>}, {transform_indices = @transform_1, window_bounds = array<i64: 128, 128>}, {transform_indices = @transform_2, window_bounds = array<i64: 512, 128>}]} {
    %c0 = arith.constant 0 : index
    %c0_0 = arith.constant 0 : index
    %0 = vector.load %arg2[%c0, %c0_0] : memref<512x128xbf16, #tpu.memory_space<vmem>>, vector<512x128xbf16>
    %c0_1 = arith.constant 0 : index
    %c0_2 = arith.constant 0 : index
    %1 = vector.load %arg3[%c0_1, %c0_2] : memref<128x128xbf16, #tpu.memory_space<vmem>>, vector<128x128xbf16>
    %cst = arith.constant dense<0.000000e+00> : vector<512x128xf32>
    %2 = tpu.matmul %0, %1, %cst {dimension_numbers = #tpu.dot_dimension_numbers<[1], [0], [0], [1], [0, 0, 1, 1], [], []>} : vector<512x128xbf16>, vector<128x128xbf16>, vector<512x128xf32> -> vector<512x128xf32>
    %3 = arith.truncf %2 : vector<512x128xf32> to vector<512x128xbf16>
    %c0_3 = arith.constant 0 : index
    %c0_4 = arith.constant 0 : index
    %4 = vector.load %arg4[%c0_3, %c0_4] : memref<512x128xbf16, #tpu.memory_space<vmem>>, vector<512x128xbf16>
    tpu.vector_store %arg4[%c0_3, %c0_4], %3 {strides = array<i32>} : memref<512x128xbf16, #tpu.memory_space<vmem>>, vector<512x128xbf16>,
    return
  }
  func.func @transform_0(%arg0: i32, %arg1: i32) -> (i32, i32) {
    %c0_i32 = arith.constant 0 : i32
    %c0_i32_0 = arith.constant 0 : i32
    return %arg0, %c0_i32 : i32, i32
  }
  func.func @transform_1(%arg0: i32, %arg1: i32) -> (i32, i32) {
    %c0_i32 = arith.constant 0 : i32
    %c0_i32_0 = arith.constant 0 : i32
    return %c0_i32, %arg1 : i32, i32
  }
  func.func @transform_2(%arg0: i32, %arg1: i32) -> (i32, i32) {
    %c0_i32 = arith.constant 0 : i32
    return %arg0, %arg1 : i32, i32
  }
}

module attributes {stable_mosaic.version = 11 : i64} {
  func.func @_inorm_relu_gemm_layout_kernel(%arg0: i32, %arg1: memref<1x256x128xbf16, #tpu.memory_space<vmem>>, %arg2: memref<1x256x128xbf16, #tpu.memory_space<vmem>>) attributes {dimension_semantics = [#tpu.dimension_semantics<parallel>], iteration_bounds = array<i64: 2>, scalar_prefetch = 0 : i64, scratch_operands = 0 : i64, tpu.core_type = #tpu.core_type<tc>, window_params = [{transform_indices = @transform_0, window_bounds = array<i64: 1, 256, 128>}, {transform_indices = @transform_1, window_bounds = array<i64: 1, 256, 128>}]} {
    %c0 = arith.constant 0 : index
    %c0_0 = arith.constant 0 : index
    %c0_1 = arith.constant 0 : index
    %0 = vector.load %arg1[%c0, %c0_0, %c0_1] : memref<1x256x128xbf16, #tpu.memory_space<vmem>>, vector<1x256x128xbf16>
    %1 = arith.extf %0 : vector<1x256x128xbf16> to vector<1x256x128xf32>
    %cst = arith.constant dense<0.000000e+00> : vector<1x128xf32>
    %2 = vector.multi_reduction <add>, %1, %cst [1] : vector<1x256x128xf32> to vector<1x128xf32>
    %3 = arith.mulf %1, %1 : vector<1x256x128xf32>
    %cst_2 = arith.constant dense<0.000000e+00> : vector<1x128xf32>
    %4 = vector.multi_reduction <add>, %3, %cst_2 [1] : vector<1x256x128xf32> to vector<1x128xf32>
    %5 = vector.extract_strided_slice %2 {offsets = [0, 0], sizes = [1, 32], strides = [1, 1]} : vector<1x128xf32> to vector<1x32xf32>
    %6 = vector.extract_strided_slice %2 {offsets = [0, 32], sizes = [1, 32], strides = [1, 1]} : vector<1x128xf32> to vector<1x32xf32>
    %7 = arith.addf %5, %6 : vector<1x32xf32>
    %8 = vector.extract_strided_slice %2 {offsets = [0, 64], sizes = [1, 32], strides = [1, 1]} : vector<1x128xf32> to vector<1x32xf32>
    %9 = arith.addf %7, %8 : vector<1x32xf32>
    %10 = vector.extract_strided_slice %2 {offsets = [0, 96], sizes = [1, 32], strides = [1, 1]} : vector<1x128xf32> to vector<1x32xf32>
    %11 = arith.addf %9, %10 : vector<1x32xf32>
    %12 = vector.extract_strided_slice %4 {offsets = [0, 0], sizes = [1, 32], strides = [1, 1]} : vector<1x128xf32> to vector<1x32xf32>
    %13 = vector.extract_strided_slice %4 {offsets = [0, 32], sizes = [1, 32], strides = [1, 1]} : vector<1x128xf32> to vector<1x32xf32>
    %14 = arith.addf %12, %13 : vector<1x32xf32>
    %15 = vector.extract_strided_slice %4 {offsets = [0, 64], sizes = [1, 32], strides = [1, 1]} : vector<1x128xf32> to vector<1x32xf32>
    %16 = arith.addf %14, %15 : vector<1x32xf32>
    %17 = vector.extract_strided_slice %4 {offsets = [0, 96], sizes = [1, 32], strides = [1, 1]} : vector<1x128xf32> to vector<1x32xf32>
    %18 = arith.addf %16, %17 : vector<1x32xf32>
    %cst_3 = arith.constant 9.765625E-4 : f32
    %19 = vector.broadcast %cst_3 : f32 to vector<1x32xf32>
    %20 = arith.mulf %11, %19 : vector<1x32xf32>
    %cst_4 = arith.constant 9.765625E-4 : f32
    %21 = vector.broadcast %cst_4 : f32 to vector<1x32xf32>
    %22 = arith.mulf %18, %21 : vector<1x32xf32>
    %23 = arith.mulf %20, %20 : vector<1x32xf32>
    %24 = arith.subf %22, %23 : vector<1x32xf32>
    %cst_5 = arith.constant 9.99999974E-6 : f32
    %25 = vector.broadcast %cst_5 : f32 to vector<1x32xf32>
    %26 = arith.addf %24, %25 : vector<1x32xf32>
    %27 = math.rsqrt %26 : vector<1x32xf32>
    %28 = tpu.concatenate %27, %27, %27, %27 in 1 : vector<1x32xf32>, vector<1x32xf32>, vector<1x32xf32>, vector<1x32xf32> -> vector<1x128xf32>
    %29 = arith.mulf %20, %27 : vector<1x32xf32>
    %30 = tpu.concatenate %29, %29, %29, %29 in 1 : vector<1x32xf32>, vector<1x32xf32>, vector<1x32xf32>, vector<1x32xf32> -> vector<1x128xf32>
    %31 = vector.shape_cast %28 : vector<1x128xf32> to vector<1x1x128xf32>
    %32 = vector.broadcast %31 : vector<1x1x128xf32> to vector<1x256x128xf32>
    %33 = arith.mulf %1, %32 : vector<1x256x128xf32>
    %34 = vector.shape_cast %30 : vector<1x128xf32> to vector<1x1x128xf32>
    %35 = vector.broadcast %34 : vector<1x1x128xf32> to vector<1x256x128xf32>
    %36 = arith.subf %33, %35 : vector<1x256x128xf32>
    %cst_6 = arith.constant 0.000000e+00 : f32
    %37 = vector.broadcast %cst_6 : f32 to vector<1x256x128xf32>
    %38 = arith.maximumf %36, %37 : vector<1x256x128xf32>
    %39 = arith.truncf %38 : vector<1x256x128xf32> to vector<1x256x128xbf16>
    %c0_7 = arith.constant 0 : index
    %c0_8 = arith.constant 0 : index
    %c0_9 = arith.constant 0 : index
    %40 = vector.load %arg2[%c0_7, %c0_8, %c0_9] : memref<1x256x128xbf16, #tpu.memory_space<vmem>>, vector<1x256x128xbf16>
    tpu.vector_store %arg2[%c0_7, %c0_8, %c0_9], %39 {strides = array<i32>} : memref<1x256x128xbf16, #tpu.memory_space<vmem>>, vector<1x256x128xbf16>,
    return
  }
  func.func @transform_0(%arg0: i32) -> (i32, i32, i32) {
    %c0_i32 = arith.constant 0 : i32
    %c0_i32_0 = arith.constant 0 : i32
    %c0_i32_1 = arith.constant 0 : i32
    return %arg0, %c0_i32, %c0_i32_0 : i32, i32, i32
  }
  func.func @transform_1(%arg0: i32) -> (i32, i32, i32) {
    %c0_i32 = arith.constant 0 : i32
    %c0_i32_0 = arith.constant 0 : i32
    %c0_i32_1 = arith.constant 0 : i32
    return %arg0, %c0_i32, %c0_i32_0 : i32, i32, i32
  }
}

</mosaic_0001>

<bundles_post_ra>
// kernel: conv2d_transpose_block_forward.2
= control target key start
LH: loop header
LB: loop body
LE: loop exit
PB: predicated region body
PF: predicated region fallthrough
CT: control target
= control target key end

     0   :  { %s1711_s1 = inlined_call_operand.vmem [shape: bf16[128,128], index: 1, kind: input, shape index: {}]   ;;  %s1712_s0 = inlined_call_operand.vmem [shape: bf16[512,128], index: 0, kind: input, shape index: {}]   ;;  %s1713_s2 = inlined_call_operand.vmem [shape: bf16[512,128], index: 2, kind: output, shape index: {}]  }
   0x1   :  { %v1440_v0 = vld [vmem:[%s1711_s1] sm:$0xff]   ;;  %v1441_v1 = vld [vmem:[%s1711_s1 + $0x8] sm:$0xff]   ;;  %v1442_v2 = vld [vmem:[%s1711_s1 + $0x10] sm:$0xff]  }
   0x2   :  { %1344 = vmatprep.subr.bf16.mxu0 %v1440_v0  ;;  %1424 = vmatprep.subr.bf16.mxu1 %v1440_v0  ;;  %v1443_v3 = vld [vmem:[%s1711_s1 + $0x18] sm:$0xff]   ;;  %v1448_v4 = vld [vmem:[%s1712_s0] sm:$0xff]   ;;  %v1445_v7 = vld [vmem:[%s1711_s1 + $0x28] sm:$0xff]  }
   0x3   :  { %1345 = vmatpush3.bf16.msra.mxu0 %v1440_v0  ;;  %1432 = vmatpush3.bf16.msra.mxu1 %v1440_v0  ;;  %v1449_v5 = vld [vmem:[%s1712_s0 + $0x80] sm:$0xff]   ;;  %v1446_v8 = vld [vmem:[%s1711_s1 + $0x30] sm:$0xff]   ;;  %v1447_v9 = vld [vmem:[%s1711_s1 + $0x38] sm:$0xff]  }
   0x4   :  { %1346 = vmatprep.subr.bf16.mxu0 %v1441_v1  ;;  %1425 = vmatprep.subr.bf16.mxu1 %v1441_v1  ;;  %v1444_v6 = vld [vmem:[%s1711_s1 + $0x20] sm:$0xff]   ;;  %v1450_v10 = vld [vmem:[%s1712_s0 + $0x8] sm:$0xff]   ;;  %v1452_v12 = vld [vmem:[%s1712_s0 + $0x10] sm:$0xff]  }
   0x5   :  { %1360 = vmatprep.mubr.bf16.mxu0 %v1448_v4  ;;  %1392 = vmatprep.mubr.bf16.mxu1 %v1449_v5  ;;  %v1451_v11 = vld [vmem:[%s1712_s0 + $0x88] sm:$0xff]   ;;  %v1453_v13 = vld [vmem:[%s1712_s0 + $0x90] sm:$0xff]   ;;  %v1454_v14 = vld [vmem:[%s1712_s0 + $0x18] sm:$0xff]  }
   0x6   :  { %v1455_v15 = vld [vmem:[%s1712_s0 + $0x98] sm:$0xff]   ;;  %v1456_v16 = vld [vmem:[%s1712_s0 + $0x20] sm:$0xff]   ;;  %v1458_v18 = vld [vmem:[%s1712_s0 + $0x28] sm:$0xff]  }
   0x7   :  { %1347 = vmatpush3.bf16.msra.mxu0 %v1441_v1  ;;  %1433 = vmatpush3.bf16.msra.mxu1 %v1441_v1  ;;  %v1457_v17 = vld [vmem:[%s1712_s0 + $0xa0] sm:$0xff]   ;;  %v1459_v19 = vld [vmem:[%s1712_s0 + $0xa8] sm:$0xff]   ;;  %v1460_v20 = vld [vmem:[%s1712_s0 + $0x30] sm:$0xff]  }
   0x8   :  { %1348 = vmatprep.subr.bf16.mxu0 %v1442_v2  ;;  %1426 = vmatprep.subr.bf16.mxu1 %v1442_v2  ;;  %v1461_v21 = vld [vmem:[%s1712_s0 + $0xb0] sm:$0xff]   ;;  %v1462_v22 = vld [vmem:[%s1712_s0 + $0x38] sm:$0xff]   ;;  %v1464_v24 = vld [vmem:[%s1712_s0 + $0x40] sm:$0xff]  }
   0x9   :  { %v1463_v23 = vld [vmem:[%s1712_s0 + $0xb8] sm:$0xff]   ;;  %v1465_v25 = vld [vmem:[%s1712_s0 + $0xc0] sm:$0xff]   ;;  %v1466_v26 = vld [vmem:[%s1712_s0 + $0x48] sm:$0xff]  }
   0xa   :  { %v1467_v27 = vld [vmem:[%s1712_s0 + $0xc8] sm:$0xff]   ;;  %v1468_v28 = vld [vmem:[%s1712_s0 + $0x50] sm:$0xff]   ;;  %v1470_v30 = vld [vmem:[%s1712_s0 + $0x58] sm:$0xff]  }
   0xb   :  { %1349 = vmatpush3.bf16.msra.mxu0 %v1442_v2  ;;  %1434 = vmatpush3.bf16.msra.mxu1 %v1442_v2  ;;  %v1469_v29 = vld [vmem:[%s1712_s0 + $0xd0] sm:$0xff]   ;;  %v1471_v31 = vld [vmem:[%s1712_s0 + $0xd8] sm:$0xff]   ;;  %v1472_v32 = vld [vmem:[%s1712_s0 + $0x60] sm:$0xff]  }
   0xc   :  { %1350 = vmatprep.subr.bf16.mxu0 %v1443_v3  ;;  %1427 = vmatprep.subr.bf16.mxu1 %v1443_v3  ;;  %v1473_v33 = vld [vmem:[%s1712_s0 + $0xe0] sm:$0xff]   ;;  %v1474_v34 = vld [vmem:[%s1712_s0 + $0x68] sm:$0xff]   ;;  %v1476_v36 = vld [vmem:[%s1712_s0 + $0x70] sm:$0xff]  }
   0xd   :  { %v1475_v35 = vld [vmem:[%s1712_s0 + $0xe8] sm:$0xff]   ;;  %v1477_v37 = vld [vmem:[%s1712_s0 + $0xf0] sm:$0xff]   ;;  %v1478_v38 = vld [vmem:[%s1712_s0 + $0x78] sm:$0xff]  }
   0xe   :  { %v1479_v39 = vld [vmem:[%s1712_s0 + $0xf8] sm:$0xff]  }
   0xf   :  { %1351 = vmatpush3.bf16.msra.mxu0 %v1443_v3  ;;  %1435 = vmatpush3.bf16.msra.mxu1 %v1443_v3 }
  0x10   :  { %1352 = vmatprep.subr.bf16.mxu0 %v1444_v6  ;;  %1428 = vmatprep.subr.bf16.mxu1 %v1444_v6 }
  0x13   :  { %1353 = vmatpush3.bf16.msra.mxu0 %v1444_v6  ;;  %1436 = vmatpush3.bf16.msra.mxu1 %v1444_v6 }
  0x14   :  { %1354 = vmatprep.subr.bf16.mxu0 %v1445_v7  ;;  %1429 = vmatprep.subr.bf16.mxu1 %v1445_v7 }
  0x17   :  { %1355 = vmatpush3.bf16.msra.mxu0 %v1445_v7  ;;  %1437 = vmatpush3.bf16.msra.mxu1 %v1445_v7 }
  0x18   :  { %1356 = vmatprep.subr.bf16.mxu0 %v1446_v8  ;;  %1430 = vmatprep.subr.bf16.mxu1 %v1446_v8 }
  0x1b   :  { %1357 = vmatpush3.bf16.msra.mxu0 %v1446_v8  ;;  %1438 = vmatpush3.bf16.msra.mxu1 %v1446_v8 }
  0x1c   :  { %1358 = vmatprep.subr.bf16.mxu0 %v1447_v9  ;;  %1431 = vmatprep.subr.bf16.mxu1 %v1447_v9 }
  0x1f   :  { %1359 = vmatpush3.bf16.msra.mxu0 %v1447_v9  ;;  %1439 = vmatpush3.bf16.msra.mxu1 %v1447_v9 }
  0x22   :  { %1361 = vmatmul.mubr.bf16.vlgmr.msra.gmra.mrb[0].mxu0 %v1450_v10  ;;  %1393 = vmatmul.mubr.bf16.vlgmr.msra.gmra.mrb[0].mxu1 %v1451_v11 }
  0x23   :  { %1364 = vmatprep.mubr.bf16.mxu0 %v1452_v12  ;;  %1396 = vmatprep.mubr.bf16.mxu1 %v1453_v13 }
  0x2a   :  { %1365 = vmatmul.mubr.bf16.gmra.mrb[4].mxu0 %v1454_v14  ;;  %1397 = vmatmul.mubr.bf16.gmra.mrb[4].mxu1 %v1455_v15 }
  0x2b   :  { %1368 = vmatprep.mubr.bf16.mxu0 %v1456_v16  ;;  %1400 = vmatprep.mubr.bf16.mxu1 %v1457_v17 }
  0x32   :  { %1369 = vmatmul.mubr.bf16.gmra.mrb[8].mxu0 %v1458_v18  ;;  %1401 = vmatmul.mubr.bf16.gmra.mrb[8].mxu1 %v1459_v19 }
  0x33   :  { %1372 = vmatprep.mubr.bf16.mxu0 %v1460_v20  ;;  %1404 = vmatprep.mubr.bf16.mxu1 %v1461_v21 }
  0x3a   :  { %1373 = vmatmul.mubr.bf16.gmra.mrb[12].mxu0 %v1462_v22  ;;  %1405 = vmatmul.mubr.bf16.gmra.mrb[12].mxu1 %v1463_v23 }
  0x3b   :  { %1376 = vmatprep.mubr.bf16.mxu0 %v1464_v24  ;;  %1408 = vmatprep.mubr.bf16.mxu1 %v1465_v25 }
  0x42   :  { %1377 = vmatmul.mubr.bf16.gmra.mrb[16].mxu0 %v1466_v26  ;;  %1409 = vmatmul.mubr.bf16.gmra.mrb[16].mxu1 %v1467_v27 }
  0x43   :  { %1380 = vmatprep.mubr.bf16.mxu0 %v1468_v28  ;;  %1412 = vmatprep.mubr.bf16.mxu1 %v1469_v29 }
  0x4a   :  { %1381 = vmatmul.mubr.bf16.gmra.mrb[20].mxu0 %v1470_v30  ;;  %1413 = vmatmul.mubr.bf16.gmra.mrb[20].mxu1 %v1471_v31 }
  0x4b   :  { %1384 = vmatprep.mubr.bf16.mxu0 %v1472_v32  ;;  %1416 = vmatprep.mubr.bf16.mxu1 %v1473_v33 }
  0x52   :  { %1385 = vmatmul.mubr.bf16.gmra.mrb[24].mxu0 %v1474_v34  ;;  %1417 = vmatmul.mubr.bf16.gmra.mrb[24].mxu1 %v1475_v35 }
  0x53   :  { %1388 = vmatprep.mubr.bf16.mxu0 %v1476_v36  ;;  %1420 = vmatprep.mubr.bf16.mxu1 %v1477_v37 }
  0x5a   :  { %1389 = vmatmul.mubr.bf16.gmra.mrb[28].mxu0 %v1478_v38  ;;  %1421 = vmatmul.mubr.bf16.gmra.mrb[28].mxu1 %v1479_v39 }
  0xf5   :  { %v1362_v40 = vpop.f32.mrb[0].mxu0  ;;  %v1394_v41 = vpop.f32.mrb[0].mxu1 }
  0xf6   :  { %v366_v42 = vpop.f32.mrb[1].mxu0  ;;  %v494_v43 = vpop.f32.mrb[1].mxu1 }
  0xf7   :  { %v1363_v44 = vpop.f32.mrb[2].mxu0  ;;  %v1395_v45 = vpop.f32.mrb[2].mxu1 }
  0xf8   :  { %v1121_v46 = vpack.c.bf16 %v1363_v44, %v1362_v40  ;;  %v1201_v47 = vpack.c.bf16 %v1395_v45, %v1394_v41  ;;  %v369_v48 = vpop.f32.mrb[3].mxu0  ;;  %v497_v49 = vpop.f32.mrb[3].mxu1 }
  0xf9   :  { %v1116_v50 = vpack.c.bf16 %v369_v48, %v366_v42  ;;  %v1196_v51 = vpack.c.bf16 %v497_v49, %v494_v43 }
  0xfa   :  { %1273 = vst [vmem:[%s1713_s2 + $0x8] sm:$0xff] %v1121_v46   ;;  %1289 = vst [vmem:[%s1713_s2 + $0x88] sm:$0xff] %v1201_v47  }
  0xfb   :  { %1117 = vst [vmem:[%s1713_s2] sm:$0xff] %v1116_v50   ;;  %1288 = vst [vmem:[%s1713_s2 + $0x80] sm:$0xff] %v1196_v51  }
  0xfd   :  { %v1366_v52 = vpop.f32.mrb[4].mxu0  ;;  %v1398_v53 = vpop.f32.mrb[4].mxu1 }
  0xfe   :  { %v382_v54 = vpop.f32.mrb[5].mxu0  ;;  %v510_v55 = vpop.f32.mrb[5].mxu1 }
  0xff   :  { %v1367_v56 = vpop.f32.mrb[6].mxu0  ;;  %v1399_v57 = vpop.f32.mrb[6].mxu1 }
 0x100   :  { %v1131_v58 = vpack.c.bf16 %v1367_v56, %v1366_v52  ;;  %v1211_v59 = vpack.c.bf16 %v1399_v57, %v1398_v53  ;;  %v385_v60 = vpop.f32.mrb[7].mxu0  ;;  %v513_v61 = vpop.f32.mrb[7].mxu1 }
 0x101   :  { %v1126_v62 = vpack.c.bf16 %v385_v60, %v382_v54  ;;  %v1206_v63 = vpack.c.bf16 %v513_v61, %v510_v55 }
 0x102   :  { %1275 = vst [vmem:[%s1713_s2 + $0x18] sm:$0xff] %v1131_v58   ;;  %1291 = vst [vmem:[%s1713_s2 + $0x98] sm:$0xff] %v1211_v59  }
 0x103   :  { %1274 = vst [vmem:[%s1713_s2 + $0x10] sm:$0xff] %v1126_v62   ;;  %1290 = vst [vmem:[%s1713_s2 + $0x90] sm:$0xff] %v1206_v63  }
 0x105   :  { %v1370_v0 = vpop.f32.mrb[8].mxu0  ;;  %v1402_v1 = vpop.f32.mrb[8].mxu1 }
 0x106   :  { %v398_v2 = vpop.f32.mrb[9].mxu0  ;;  %v526_v3 = vpop.f32.mrb[9].mxu1 }
 0x107   :  { %v1371_v4 = vpop.f32.mrb[10].mxu0  ;;  %v1403_v5 = vpop.f32.mrb[10].mxu1 }
 0x108   :  { %v1141_v6 = vpack.c.bf16 %v1371_v4, %v1370_v0  ;;  %v1221_v7 = vpack.c.bf16 %v1403_v5, %v1402_v1  ;;  %v401_v8 = vpop.f32.mrb[11].mxu0  ;;  %v529_v9 = vpop.f32.mrb[11].mxu1 }
 0x109   :  { %v1136_v10 = vpack.c.bf16 %v401_v8, %v398_v2  ;;  %v1216_v11 = vpack.c.bf16 %v529_v9, %v526_v3 }
 0x10a   :  { %1277 = vst [vmem:[%s1713_s2 + $0x28] sm:$0xff] %v1141_v6   ;;  %1293 = vst [vmem:[%s1713_s2 + $0xa8] sm:$0xff] %v1221_v7  }
 0x10b   :  { %1276 = vst [vmem:[%s1713_s2 + $0x20] sm:$0xff] %v1136_v10   ;;  %1292 = vst [vmem:[%s1713_s2 + $0xa0] sm:$0xff] %v1216_v11  }
 0x10d   :  { %v1374_v12 = vpop.f32.mrb[12].mxu0  ;;  %v1406_v13 = vpop.f32.mrb[12].mxu1 }
 0x10e   :  { %v414_v14 = vpop.f32.mrb[13].mxu0  ;;  %v542_v15 = vpop.f32.mrb[13].mxu1 }
 0x10f   :  { %v1375_v16 = vpop.f32.mrb[14].mxu0  ;;  %v1407_v17 = vpop.f32.mrb[14].mxu1 }
 0x110   :  { %v1151_v18 = vpack.c.bf16 %v1375_v16, %v1374_v12  ;;  %v1231_v19 = vpack.c.bf16 %v1407_v17, %v1406_v13  ;;  %v417_v20 = vpop.f32.mrb[15].mxu0  ;;  %v545_v21 = vpop.f32.mrb[15].mxu1 }
 0x111   :  { %v1146_v22 = vpack.c.bf16 %v417_v20, %v414_v14  ;;  %v1226_v23 = vpack.c.bf16 %v545_v21, %v542_v15 }
 0x112   :  { %1279 = vst [vmem:[%s1713_s2 + $0x38] sm:$0xff] %v1151_v18   ;;  %1295 = vst [vmem:[%s1713_s2 + $0xb8] sm:$0xff] %v1231_v19  }
 0x113   :  { %1278 = vst [vmem:[%s1713_s2 + $0x30] sm:$0xff] %v1146_v22   ;;  %1294 = vst [vmem:[%s1713_s2 + $0xb0] sm:$0xff] %v1226_v23  }
 0x115   :  { %v1378_v24 = vpop.f32.mrb[16].mxu0  ;;  %v1410_v25 = vpop.f32.mrb[16].mxu1 }
 0x116   :  { %v430_v26 = vpop.f32.mrb[17].mxu0  ;;  %v558_v27 = vpop.f32.mrb[17].mxu1 }
 0x117   :  { %v1379_v28 = vpop.f32.mrb[18].mxu0  ;;  %v1411_v29 = vpop.f32.mrb[18].mxu1 }
 0x118   :  { %v1161_v30 = vpack.c.bf16 %v1379_v28, %v1378_v24  ;;  %v1241_v31 = vpack.c.bf16 %v1411_v29, %v1410_v25  ;;  %v433_v32 = vpop.f32.mrb[19].mxu0  ;;  %v561_v33 = vpop.f32.mrb[19].mxu1 }
 0x119   :  { %v1156_v34 = vpack.c.bf16 %v433_v32, %v430_v26  ;;  %v1236_v35 = vpack.c.bf16 %v561_v33, %v558_v27 }
 0x11a   :  { %1281 = vst [vmem:[%s1713_s2 + $0x48] sm:$0xff] %v1161_v30   ;;  %1297 = vst [vmem:[%s1713_s2 + $0xc8] sm:$0xff] %v1241_v31  }
 0x11b   :  { %1280 = vst [vmem:[%s1713_s2 + $0x40] sm:$0xff] %v1156_v34   ;;  %1296 = vst [vmem:[%s1713_s2 + $0xc0] sm:$0xff] %v1236_v35  }
 0x11d   :  { %v1382_v36 = vpop.f32.mrb[20].mxu0  ;;  %v1414_v37 = vpop.f32.mrb[20].mxu1 }
 0x11e   :  { %v446_v38 = vpop.f32.mrb[21].mxu0  ;;  %v574_v39 = vpop.f32.mrb[21].mxu1 }
 0x11f   :  { %v1383_v40 = vpop.f32.mrb[22].mxu0  ;;  %v1415_v41 = vpop.f32.mrb[22].mxu1 }
 0x120   :  { %v1171_v42 = vpack.c.bf16 %v1383_v40, %v1382_v36  ;;  %v1251_v43 = vpack.c.bf16 %v1415_v41, %v1414_v37  ;;  %v449_v44 = vpop.f32.mrb[23].mxu0  ;;  %v577_v45 = vpop.f32.mrb[23].mxu1 }
 0x121   :  { %v1166_v46 = vpack.c.bf16 %v449_v44, %v446_v38  ;;  %v1246_v47 = vpack.c.bf16 %v577_v45, %v574_v39 }
 0x122   :  { %1283 = vst [vmem:[%s1713_s2 + $0x58] sm:$0xff] %v1171_v42   ;;  %1299 = vst [vmem:[%s1713_s2 + $0xd8] sm:$0xff] %v1251_v43  }
 0x123   :  { %1282 = vst [vmem:[%s1713_s2 + $0x50] sm:$0xff] %v1166_v46   ;;  %1298 = vst [vmem:[%s1713_s2 + $0xd0] sm:$0xff] %v1246_v47  }
 0x125   :  { %v1386_v48 = vpop.f32.mrb[24].mxu0  ;;  %v1418_v49 = vpop.f32.mrb[24].mxu1 }
 0x126   :  { %v462_v50 = vpop.f32.mrb[25].mxu0  ;;  %v590_v51 = vpop.f32.mrb[25].mxu1 }
 0x127   :  { %v1387_v52 = vpop.f32.mrb[26].mxu0  ;;  %v1419_v53 = vpop.f32.mrb[26].mxu1 }
 0x128   :  { %v1181_v54 = vpack.c.bf16 %v1387_v52, %v1386_v48  ;;  %v1261_v55 = vpack.c.bf16 %v1419_v53, %v1418_v49  ;;  %v465_v56 = vpop.f32.mrb[27].mxu0  ;;  %v593_v57 = vpop.f32.mrb[27].mxu1 }
 0x129   :  { %v1176_v58 = vpack.c.bf16 %v465_v56, %v462_v50  ;;  %v1256_v59 = vpack.c.bf16 %v593_v57, %v590_v51 }
 0x12a   :  { %1285 = vst [vmem:[%s1713_s2 + $0x68] sm:$0xff] %v1181_v54   ;;  %1301 = vst [vmem:[%s1713_s2 + $0xe8] sm:$0xff] %v1261_v55  }
 0x12b   :  { %1284 = vst [vmem:[%s1713_s2 + $0x60] sm:$0xff] %v1176_v58   ;;  %1300 = vst [vmem:[%s1713_s2 + $0xe0] sm:$0xff] %v1256_v59  }
 0x12d   :  { %v1390_v60 = vpop.f32.mrb[28].mxu0  ;;  %v1422_v61 = vpop.f32.mrb[28].mxu1 }
 0x12e   :  { %v478_v62 = vpop.f32.mrb[29].mxu0  ;;  %v606_v63 = vpop.f32.mrb[29].mxu1 }
 0x12f   :  { %v1391_v0 = vpop.f32.mrb[30].mxu0  ;;  %v1423_v1 = vpop.f32.mrb[30].mxu1 }
 0x130   :  { %v1191_v2 = vpack.c.bf16 %v1391_v0, %v1390_v60  ;;  %v1271_v3 = vpack.c.bf16 %v1423_v1, %v1422_v61  ;;  %v481_v4 = vpop.f32.mrb[31].mxu0  ;;  %v609_v5 = vpop.f32.mrb[31].mxu1 }
 0x131   :  { %v1186_v6 = vpack.c.bf16 %v481_v4, %v478_v62  ;;  %v1266_v7 = vpack.c.bf16 %v609_v5, %v606_v63 }
 0x132   :  { %1287 = vst [vmem:[%s1713_s2 + $0x78] sm:$0xff] %v1191_v2   ;;  %1303 = vst [vmem:[%s1713_s2 + $0xf8] sm:$0xff] %v1271_v3  }
 0x133   :  { %1286 = vst [vmem:[%s1713_s2 + $0x70] sm:$0xff] %v1186_v6   ;;  %1302 = vst [vmem:[%s1713_s2 + $0xf0] sm:$0xff] %v1266_v7  }

// kernel: conv2d_transpose_block_forward.3
= control target key start
LH: loop header
LB: loop body
LE: loop exit
PB: predicated region body
PF: predicated region fallthrough
CT: control target
= control target key end

     0   :  { %s953_s6 = smov 0   ;;  %s1353_s0 = inlined_call_operand.vmem [shape: bf16[2,256,128], index: 0, kind: input, shape index: {}]   ;;  %s1354_s1 = inlined_call_operand.vmem [shape: bf16[2,256,128], index: 1, kind: output, shape index: {}]  }
   0x1 LB: > { %s668_s7 = sadd.s32 4294967295, %s938_s6   ;;  %p672_p0 = scmp.ge.s32.totalorder %s938_s6, 1  ;;  %s938_s6 = sphi %s953_s6, %s11_s6  }
   0x2   : > { %p87_p1 = scmp.lt.s32.totalorder %s938_s6, 3 }
   0x4   : > { %p88_p2 = pnand %p672_p0, %p87_p1 }
   0x5   : > { %p107_p3 = scmp.lt.s32.totalorder (!%p88_p2), %s668_s7, 1  ;;  %s940_s12 = smov (!%p88_p2), 96   ;;  %vm329_vm0 = vcmask (!%p88_p2), 261120   ;;  %vm331_vm1 = vcmask (!%p88_p2), 523264   ;;  %vm333_vm2 = vcmask (!%p88_p2), 785408  }
   0x6   : > { %91 = sbr.rel (%p88_p2) target bundleno = 394 (0x18a), region = 24  ;;  %s941_s13 = smov (!%p88_p2), 32  }
   0x7   : > { %s942_s14 = smov (!%p88_p2), 64  }
   0xd   : > { %s1356_s7 = smov (!%p107_p3, %s668_s7), 1 }
   0xe   : > { %s711_s8 = sshll.u32 %s1356_s7, 7 }
   0xf   : > { %s969_s11 = scalar_lea.vmem %s1353_s0, %s711_s8  ;;  %s1332_s17 = scalar_lea.vmem %s1354_s1, %s711_s8 }
  0x10   : > { %v746_v0 = vld [vmem:[%s969_s11] sm:$0xff]   ;;  %v889_v1 = vld [vmem:[%s969_s11 + $0x8] sm:$0xff]   ;;  %v890_v5 = vld [vmem:[%s969_s11 + $0x10] sm:$0xff]  }
  0x11   : > { %v973_v2 = vunpack.c.l.bf16 %v746_v0  ;;  %v975_v3 = vunpack.c.h.bf16 %v746_v0  ;;  %v977_v4 = vunpack.c.l.bf16 %v889_v1  ;;  %v980_v6 = vunpack.c.h.bf16 %v889_v1  ;;  %v891_v10 = vld [vmem:[%s969_s11 + $0x18] sm:$0xff]   ;;  %v892_v17 = vld [vmem:[%s969_s11 + $0x20] sm:$0xff]   ;;  %v893_v25 = vld [vmem:[%s969_s11 + $0x28] sm:$0xff]  }
  0x12   : > { %v984_v8 = vunpack.c.l.bf16 %v890_v5  ;;  %v988_v11 = vunpack.c.h.bf16 %v890_v5  ;;  %v995_v15 = vunpack.c.l.bf16 %v891_v10  ;;  %v1001_v19 = vunpack.c.h.bf16 %v891_v10  ;;  %v894_v34 = vld [vmem:[%s969_s11 + $0x30] sm:$0xff]   ;;  %v895_v43 = vld [vmem:[%s969_s11 + $0x38] sm:$0xff]   ;;  %v896_v52 = vld [vmem:[%s969_s11 + $0x40] sm:$0xff]  }
  0x13   : > { %v181_v7 = vadd.f32 %v975_v3, %v973_v2  ;;  %v218_v13 = vmul.f32 %v973_v2, %v973_v2  ;;  %v219_v14 = vmul.f32 %v975_v3, %v975_v3  ;;  %v220_v18 = vmul.f32 %v977_v4, %v977_v4  ;;  %v897_v61 = vld [vmem:[%s969_s11 + $0x48] sm:$0xff]  }
  0x14   : > { %v221_v21 = vmul.f32 %v980_v6, %v980_v6  ;;  %v1006_v23 = vunpack.c.l.bf16 %v892_v17  ;;  %v222_v26 = vmul.f32 %v984_v8, %v984_v8  ;;  %v1012_v28 = vunpack.c.h.bf16 %v892_v17 }
  0x15   : > { %v182_v9 = vadd.f32 %v977_v4, %v181_v7  ;;  %v250_v22 = vadd.f32 %v219_v14, %v218_v13  ;;  %v223_v30 = vmul.f32 %v988_v11, %v988_v11  ;;  %v1017_v32 = vunpack.c.l.bf16 %v893_v25 }
  0x16   : > { %v224_v35 = vmul.f32 %v995_v15, %v995_v15  ;;  %v1023_v37 = vunpack.c.h.bf16 %v893_v25  ;;  %v225_v39 = vmul.f32 %v1001_v19, %v1001_v19  ;;  %v1028_v41 = vunpack.c.l.bf16 %v894_v34 }
  0x17   : > { %v183_v12 = vadd.f32 %v980_v6, %v182_v9  ;;  %v251_v27 = vadd.f32 %v250_v22, %v220_v18  ;;  %v226_v44 = vmul.f32 %v1006_v23, %v1006_v23  ;;  %v1034_v46 = vunpack.c.h.bf16 %v894_v34 }
  0x18   : > { %v227_v48 = vmul.f32 %v1012_v28, %v1012_v28  ;;  %v1039_v50 = vunpack.c.l.bf16 %v895_v43  ;;  %v228_v53 = vmul.f32 %v1017_v32, %v1017_v32  ;;  %v1045_v55 = vunpack.c.h.bf16 %v895_v43 }
  0x19   : > { %v184_v16 = vadd.f32 %v984_v8, %v183_v12  ;;  %v252_v31 = vadd.f32 %v251_v27, %v221_v21  ;;  %v229_v57 = vmul.f32 %v1023_v37, %v1023_v37  ;;  %v1050_v59 = vunpack.c.l.bf16 %v896_v52  ;;  %v898_v12 = vld [vmem:[%s969_s11 + $0x50] sm:$0xff]  }
  0x1a   : > { %v230_v62 = vmul.f32 %v1028_v41, %v1028_v41  ;;  %v1056_v0 = vunpack.c.h.bf16 %v896_v52  ;;  %v231_v5 = vmul.f32 %v1034_v46, %v1034_v46  ;;  %v1061_v9 = vunpack.c.l.bf16 %v897_v61 }
  0x1b   : > { %v185_v20 = vadd.f32 %v988_v11, %v184_v16  ;;  %v253_v36 = vadd.f32 %v252_v31, %v222_v26  ;;  %v232_v13 = vmul.f32 %v1039_v50, %v1039_v50  ;;  %v1067_v16 = vunpack.c.h.bf16 %v897_v61 }
  0x1c   : > { %v233_v18 = vmul.f32 %v1045_v55, %v1045_v55  ;;  %v1072_v21 = vunpack.c.l.bf16 %v898_v12  ;;  %v234_v25 = vmul.f32 %v1050_v59, %v1050_v59  ;;  %v1078_v27 = vunpack.c.h.bf16 %v898_v12  ;;  %v903_v12 = vld [vmem:[%s969_s11 + $0x78] sm:$0xff]  }
  0x1d   : > { %v186_v24 = vadd.f32 %v995_v15, %v185_v20  ;;  %v254_v40 = vadd.f32 %v253_v36, %v223_v30  ;;  %v235_v30 = vmul.f32 %v1056_v0, %v1056_v0  ;;  %v236_v36 = vmul.f32 %v1061_v9, %v1061_v9 }
  0x1f   : > { %v187_v29 = vadd.f32 %v1001_v19, %v186_v24  ;;  %v255_v45 = vadd.f32 %v254_v40, %v224_v35  ;;  %v899_v24 = vld [vmem:[%s969_s11 + $0x58] sm:$0xff]   ;;  %v900_v35 = vld [vmem:[%s969_s11 + $0x60] sm:$0xff]  }
  0x21   : > { %v188_v33 = vadd.f32 %v1006_v23, %v187_v29  ;;  %v256_v49 = vadd.f32 %v255_v45, %v225_v39  ;;  %v1089_v39 = vunpack.c.h.bf16 %v899_v24 }
  0x23   : > { %v189_v38 = vadd.f32 %v1012_v28, %v188_v33  ;;  %v257_v54 = vadd.f32 %v256_v49, %v226_v44  ;;  %v1083_v33 = vunpack.c.l.bf16 %v899_v24  ;;  %v1094_v44 = vunpack.c.l.bf16 %v900_v35 }
  0x24   : > { %v1127_v24 = vunpack.c.l.bf16 %v903_v12 }
  0x25   : > { %v190_v42 = vadd.f32 %v1017_v32, %v189_v38  ;;  %v258_v58 = vadd.f32 %v257_v54, %v227_v48  ;;  %v238_v48 = vmul.f32 %v1072_v21, %v1072_v21 }
  0x27   : > { %v191_v47 = vadd.f32 %v1023_v37, %v190_v42  ;;  %v259_v63 = vadd.f32 %v258_v58, %v228_v53  ;;  %v237_v42 = vmul.f32 %v1067_v16, %v1067_v16  ;;  %v239_v53 = vmul.f32 %v1078_v27, %v1078_v27  ;;  %v902_v58 = vld [vmem:[%s969_s11 + $0x70] sm:$0xff]  }
  0x29   : > { %v192_v51 = vadd.f32 %v1028_v41, %v191_v47  ;;  %v260_v7 = vadd.f32 %v259_v63, %v229_v57  ;;  %v901_v47 = vld [vmem:[%s969_s11 + $0x68] sm:$0xff]  }
  0x2b   : > { %v193_v56 = vadd.f32 %v1034_v46, %v192_v51  ;;  %v261_v14 = vadd.f32 %v260_v7, %v230_v62  ;;  %v1100_v51 = vunpack.c.h.bf16 %v900_v35  ;;  %v1111_v62 = vunpack.c.h.bf16 %v901_v47 }
  0x2c   : > { %v1116_v7 = vunpack.c.l.bf16 %v902_v58 }
  0x2d   : > { %v194_v60 = vadd.f32 %v1039_v50, %v193_v56  ;;  %v262_v20 = vadd.f32 %v261_v14, %v231_v5  ;;  %v1105_v56 = vunpack.c.l.bf16 %v901_v47 }
  0x2f   : > { %v195_v1 = vadd.f32 %v1045_v55, %v194_v60  ;;  %v263_v26 = vadd.f32 %v262_v20, %v232_v13  ;;  %v240_v60 = vmul.f32 %v1083_v33, %v1083_v33  ;;  %v242_v13 = vmul.f32 %v1094_v44, %v1094_v44 }
  0x30   : > { %v243_v20 = vmul.f32 %v1100_v51, %v1100_v51 }
  0x31   : > { %v196_v10 = vadd.f32 %v1050_v59, %v195_v1  ;;  %v264_v31 = vadd.f32 %v263_v26, %v233_v18  ;;  %v241_v1 = vmul.f32 %v1089_v39, %v1089_v39  ;;  %v244_v26 = vmul.f32 %v1105_v56, %v1105_v56 }
  0x33   : > { %v197_v17 = vadd.f32 %v1056_v0, %v196_v10  ;;  %v265_v38 = vadd.f32 %v264_v31, %v234_v25 }
  0x35   : > { %v198_v22 = vadd.f32 %v1061_v9, %v197_v17  ;;  %v266_v43 = vadd.f32 %v265_v38, %v235_v30  ;;  %v1122_v17 = vunpack.c.h.bf16 %v902_v58  ;;  %v1132_v30 = vunpack.c.h.bf16 %v903_v12 }
  0x36   : > { %v246_v38 = vmul.f32 %v1116_v7, %v1116_v7 }
  0x37   : > { %v199_v29 = vadd.f32 %v1067_v16, %v198_v22  ;;  %v267_v49 = vadd.f32 %v266_v43, %v236_v36  ;;  %v247_v43 = vmul.f32 %v1122_v17, %v1122_v17 }
  0x39   : > { %v200_v34 = vadd.f32 %v1072_v21, %v199_v29  ;;  %v268_v54 = vadd.f32 %v267_v49, %v237_v42 }
  0x3b   : > { %v201_v40 = vadd.f32 %v1078_v27, %v200_v34  ;;  %v269_v61 = vadd.f32 %v268_v54, %v238_v48  ;;  %v245_v34 = vmul.f32 %v1111_v62, %v1111_v62  ;;  %v248_v48 = vmul.f32 %v1127_v24, %v1127_v24 }
  0x3d   : > { %v202_v45 = vadd.f32 %v1083_v33, %v201_v40  ;;  %v270_v5 = vadd.f32 %v269_v61, %v239_v53  ;;  %v249_v53 = vmul.f32 %v1132_v30, %v1132_v30 }
  0x3f   : > { %v203_v52 = vadd.f32 %v1089_v39, %v202_v45  ;;  %v271_v14 = vadd.f32 %v270_v5, %v240_v60 }
  0x41   : > { %v204_v57 = vadd.f32 %v1094_v44, %v203_v52  ;;  %v272_v22 = vadd.f32 %v271_v14, %v241_v1 }
  0x43   : > { %v205_v63 = vadd.f32 %v1100_v51, %v204_v57  ;;  %v273_v29 = vadd.f32 %v272_v22, %v242_v13 }
  0x45   : > { %v206_v10 = vadd.f32 %v1105_v56, %v205_v63  ;;  %v274_v35 = vadd.f32 %v273_v29, %v243_v20 }
  0x47   : > { %v207_v18 = vadd.f32 %v1111_v62, %v206_v10  ;;  %v275_v40 = vadd.f32 %v274_v35, %v244_v26 }
  0x49   : > { %v208_v25 = vadd.f32 %v1116_v7, %v207_v18  ;;  %v276_v45 = vadd.f32 %v275_v40, %v245_v34 }
  0x4b   : > { %v209_v31 = vadd.f32 %v1122_v17, %v208_v25  ;;  %v277_v49 = vadd.f32 %v276_v45, %v246_v38 }
  0x4d   : > { %v210_v36 = vadd.f32 %v1127_v24, %v209_v31  ;;  %v278_v54 = vadd.f32 %v277_v49, %v247_v43 }
  0x4f   : > { %v211_v42 = vadd.f32 %v1132_v30, %v210_v36  ;;  %v279_v58 = vadd.f32 %v278_v54, %v248_v48  ;;  %v349_v54 = vlaneseq }
  0x51   : > { %v212_v47 = vrot.slane %v211_v42, 4  ;;  %v280_v61 = vadd.f32 %v279_v58, %v249_v53 }
  0x53   : > { %v213_v52 = vadd.f32 %v212_v47, %v211_v42  ;;  %v281_v1 = vrot.slane %v280_v61, 4 }
  0x55   : > { %v214_v57 = vrot.slane %v213_v52, 2  ;;  %v282_v10 = vadd.f32 %v281_v1, %v280_v61 }
  0x57   : > { %v215_v60 = vadd.f32 %v214_v57, %v213_v52  ;;  %v283_v12 = vrot.slane %v282_v10, 2  ;;  %v350_v57 = vshrl.u32 %v349_v54, 7 }
  0x59   : > { %v216_v63 = vrot.slane %v215_v60, 1  ;;  %v284_v13 = vadd.f32 %v283_v12, %v282_v10 }
  0x5b   : > { %v217_v5 = vadd.f32 %v216_v63, %v215_v60  ;;  %v285_v14 = vrot.slane %v284_v13, 1  ;;  %v351_v63 = vsub.s32 0, %v350_v57 }
  0x5d   : > { %288 = vrot.lane.b32.xlu0 %v217_v5, %s940_s12  ;;  %296 = vrot.lane.b32.xlu1 %v217_v5, %s941_s13  ;;  %v286_v18 = vadd.f32 %v285_v14, %v284_v13 }
  0x61   : > { %292 = vrot.lane.b32.xlu0 %v217_v5, %s942_s14  ;;  %301 = vrot.lane.b32.xlu1 %v286_v18, %s940_s12 }
  0x65   : > { %305 = vrot.lane.b32.xlu0 %v286_v18, %s942_s14  ;;  %309 = vrot.lane.b32.xlu1 %v286_v18, %s941_s13 }
  0xcf   : > { %v289_v20 = vpop.permute.xlu0 %288  ;;  %v297_v25 = vpop.permute.xlu1 %296 }
  0xd0   : > { %v291_v22 = vadd.f32 %v289_v20, %v217_v5 }
  0xd3   : > { %v293_v26 = vpop.permute.xlu0 %292  ;;  %v302_v34 = vpop.permute.xlu1 %301 }
  0xd4   : > { %v295_v29 = vadd.f32 %v293_v26, %v291_v22  ;;  %v304_v36 = vadd.f32 %v302_v34, %v286_v18 }
  0xd6   : > { %v299_v31 = vadd.f32 %v297_v25, %v295_v29 }
  0xd7   : > { %v306_v35 = vpop.permute.xlu0 %305  ;;  %v310_v42 = vpop.permute.xlu1 %309 }
  0xd8   : > { %v313_v38 = vmul.f32 0.0009765625, %v299_v31  ;;  %v308_v40 = vadd.f32 %v306_v35, %v304_v36 }
  0xda   : > { %v312_v43 = vadd.f32 %v310_v42, %v308_v40  ;;  %v315_v47 = vmul.f32 %v313_v38, %v313_v38 }
  0xdc   : > { %v314_v45 = vmul.f32 0.0009765625, %v312_v43 }
  0xde   : > { %v316_v48 = vsub.f32 %v314_v45, %v315_v47 }
  0xe0   : > { %v317_v49 = vadd.f32 1e-05, %v316_v48 }
  0xe2   : > { %930 = vrsqrt.f32 %v317_v49 }
  0xec   : > { %v931_v52 = vpop.eup %930 }
  0xed   : > { %323 = vrot.lane.b32.xlu1 %v931_v52, %s942_s14  ;;  %320 = vrot.lane.b32.xlu0 %v931_v52, %s941_s13  ;;  %v335_v53 = vmul.f32 %v931_v52, %v313_v38 }
  0xf1   : > { %326 = vrot.lane.b32.xlu0 %v931_v52, %s940_s12  ;;  %337 = vrot.lane.b32.xlu1 %v335_v53, %s941_s13 }
  0xf5   : > { %340 = vrot.lane.b32.xlu0 %v335_v53, %s942_s14  ;;  %343 = vrot.lane.b32.xlu1 %v335_v53, %s940_s12 }
 0x15f   : > { %v321_v58 = vpop.permute.xlu0 %320  ;;  %v324_v60 = vpop.permute.xlu1 %323 }
 0x160   : > { %v330_v61 = vsel %vm329_vm0, %v931_v52, %v321_v58 }
 0x161   : > { %v332_v1 = vsel %vm331_vm1, %v330_v61, %v324_v60 }
 0x163   : > { %v327_v5 = vpop.permute.xlu0 %326  ;;  %v338_v13 = vpop.permute.xlu1 %337 }
 0x164   : > { %v334_v10 = vsel %vm333_vm2, %v332_v1, %v327_v5  ;;  %v346_v22 = vsel %vm329_vm0, %v335_v53, %v338_v13 }
 0x165   : > { %v352_v12 = vrot.slane %v334_v10, %v351_v63 }
 0x167   : > { %v1163_v14 = vmul.f32 %v973_v2, %v352_v12  ;;  %v1166_v18 = vmul.f32 %v975_v3, %v352_v12  ;;  %v1169_v20 = vmul.f32 %v977_v4, %v352_v12  ;;  %v1173_v25 = vmul.f32 %v980_v6, %v352_v12 }
 0x168   : > { %v1176_v26 = vmul.f32 %v984_v8, %v352_v12  ;;  %v1179_v29 = vmul.f32 %v988_v11, %v352_v12  ;;  %v1182_v2 = vmul.f32 %v995_v15, %v352_v12  ;;  %v1185_v3 = vmul.f32 %v1001_v19, %v352_v12  ;;  %v341_v8 = vpop.permute.xlu0 %340 }
 0x169   : > { %v1188_v4 = vmul.f32 %v1006_v23, %v352_v12  ;;  %v1191_v31 = vmul.f32 %v1012_v28, %v352_v12  ;;  %v1194_v6 = vmul.f32 %v1017_v32, %v352_v12  ;;  %v1197_v34 = vmul.f32 %v1023_v37, %v352_v12  ;;  %v344_v23 = vpop.permute.xlu1 %343 }
 0x16a   : > { %v1200_v11 = vmul.f32 %v1028_v41, %v352_v12  ;;  %v1203_v15 = vmul.f32 %v1034_v46, %v352_v12  ;;  %v1206_v19 = vmul.f32 %v1039_v50, %v352_v12  ;;  %v1209_v28 = vmul.f32 %v1045_v55, %v352_v12 }
 0x16b   : > { %v1212_v32 = vmul.f32 %v1050_v59, %v352_v12  ;;  %v1215_v35 = vmul.f32 %v1056_v0, %v352_v12  ;;  %v1218_v37 = vmul.f32 %v1061_v9, %v352_v12  ;;  %v1221_v41 = vmul.f32 %v1067_v16, %v352_v12 }
 0x16c   : > { %v1224_v46 = vmul.f32 %v1072_v21, %v352_v12  ;;  %v1227_v50 = vmul.f32 %v1078_v27, %v352_v12  ;;  %v347_v55 = vsel %vm331_vm1, %v346_v22, %v341_v8  ;;  %v1231_v59 = vmul.f32 %v1083_v33, %v352_v12 }
 0x16d   : > { %v1234_v0 = vmul.f32 %v1089_v39, %v352_v12  ;;  %v1237_v9 = vmul.f32 %v1094_v44, %v352_v12  ;;  %v348_v16 = vsel %vm333_vm2, %v347_v55, %v344_v23  ;;  %v1241_v36 = vmul.f32 %v1100_v51, %v352_v12 }
 0x16e   : > { %v1244_v21 = vmul.f32 %v1105_v56, %v352_v12  ;;  %v1247_v27 = vmul.f32 %v1111_v62, %v352_v12  ;;  %v1249_v38 = vrot.slane %v348_v16, %v351_v63  ;;  %v1252_v33 = vmul.f32 %v1116_v7, %v352_v12 }
 0x16f   : > { %v1255_v39 = vmul.f32 %v1122_v17, %v352_v12  ;;  %v1258_v44 = vmul.f32 %v1127_v24, %v352_v12  ;;  %v1261_v51 = vmul.f32 %v1132_v30, %v352_v12 }
 0x170   : > { %v389_v56 = vsub.f32 %v1163_v14, %v1249_v38  ;;  %v390_v62 = vsub.f32 %v1166_v18, %v1249_v38  ;;  %v391_v40 = vsub.f32 %v1169_v20, %v1249_v38  ;;  %v392_v7 = vsub.f32 %v1173_v25, %v1249_v38 }
 0x171   : > { %v393_v17 = vsub.f32 %v1176_v26, %v1249_v38  ;;  %v394_v24 = vsub.f32 %v1179_v29, %v1249_v38  ;;  %v395_v30 = vsub.f32 %v1182_v2, %v1249_v38  ;;  %v396_v42 = vsub.f32 %v1185_v3, %v1249_v38 }
 0x172   : > { %v397_v43 = vsub.f32 %v1188_v4, %v1249_v38  ;;  %v398_v45 = vsub.f32 %v1191_v31, %v1249_v38  ;;  %v399_v47 = vsub.f32 %v1194_v6, %v1249_v38  ;;  %v400_v48 = vsub.f32 %v1197_v34, %v1249_v38 }
 0x173   : > { %v401_v49 = vsub.f32 %v1200_v11, %v1249_v38  ;;  %v402_v52 = vsub.f32 %v1203_v15, %v1249_v38  ;;  %v403_v53 = vsub.f32 %v1206_v19, %v1249_v38  ;;  %v404_v54 = vsub.f32 %v1209_v28, %v1249_v38 }
 0x174   : > { %v405_v57 = vsub.f32 %v1212_v32, %v1249_v38  ;;  %v406_v58 = vsub.f32 %v1215_v35, %v1249_v38  ;;  %v407_v60 = vsub.f32 %v1218_v37, %v1249_v38  ;;  %v408_v61 = vsub.f32 %v1221_v41, %v1249_v38 }
 0x175   : > { %v409_v63 = vsub.f32 %v1224_v46, %v1249_v38  ;;  %v410_v1 = vsub.f32 %v1227_v50, %v1249_v38  ;;  %v411_v5 = vsub.f32 %v1231_v59, %v1249_v38  ;;  %v412_v10 = vsub.f32 %v1234_v0, %v1249_v38 }
 0x176   : > { %v413_v12 = vsub.f32 %v1237_v9, %v1249_v38  ;;  %v414_v13 = vsub.f32 %v1241_v36, %v1249_v38  ;;  %v415_v14 = vsub.f32 %v1244_v21, %v1249_v38  ;;  %v416_v18 = vsub.f32 %v1247_v27, %v1249_v38 }
 0x177   : > { %v417_v20 = vsub.f32 %v1252_v33, %v1249_v38  ;;  %v418_v22 = vsub.f32 %v1255_v39, %v1249_v38  ;;  %v419_v25 = vsub.f32 %v1258_v44, %v1249_v38  ;;  %v420_v26 = vsub.f32 %v1261_v51, %v1249_v38 }
 0x178   : > { %v421_v29 = vmax.f32 %v389_v56, 0.0  ;;  %v422_v2 = vmax.f32 %v390_v62, 0.0  ;;  %v423_v3 = vmax.f32 %v391_v40, 0.0  ;;  %v424_v4 = vmax.f32 %v392_v7, 0.0 }
 0x179   : > { %v425_v31 = vmax.f32 %v393_v17, 0.0  ;;  %v426_v6 = vmax.f32 %v394_v24, 0.0  ;;  %v427_v8 = vmax.f32 %v395_v30, 0.0  ;;  %v428_v34 = vmax.f32 %v396_v42, 0.0 }
 0x17a   : > { %v429_v11 = vmax.f32 %v397_v43, 0.0  ;;  %v430_v15 = vmax.f32 %v398_v45, 0.0  ;;  %v431_v19 = vmax.f32 %v399_v47, 0.0  ;;  %v432_v23 = vmax.f32 %v400_v48, 0.0 }
 0x17b   : > { %v433_v28 = vmax.f32 %v401_v49, 0.0  ;;  %v434_v32 = vmax.f32 %v402_v52, 0.0  ;;  %v435_v35 = vmax.f32 %v403_v53, 0.0  ;;  %v436_v37 = vmax.f32 %v404_v54, 0.0 }
 0x17c   : > { %v437_v41 = vmax.f32 %v405_v57, 0.0  ;;  %v438_v46 = vmax.f32 %v406_v58, 0.0  ;;  %v439_v50 = vmax.f32 %v407_v60, 0.0  ;;  %v440_v55 = vmax.f32 %v408_v61, 0.0 }
 0x17d   : > { %v441_v59 = vmax.f32 %v409_v63, 0.0  ;;  %v442_v0 = vmax.f32 %v410_v1, 0.0  ;;  %v443_v9 = vmax.f32 %v411_v5, 0.0  ;;  %v444_v16 = vmax.f32 %v412_v10, 0.0 }
 0x17e   : > { %v445_v36 = vmax.f32 %v413_v12, 0.0  ;;  %v446_v21 = vmax.f32 %v414_v13, 0.0  ;;  %v447_v27 = vmax.f32 %v415_v14, 0.0  ;;  %v448_v38 = vmax.f32 %v416_v18, 0.0 }
 0x17f   : > { %v449_v33 = vmax.f32 %v417_v20, 0.0  ;;  %v450_v39 = vmax.f32 %v418_v22, 0.0  ;;  %v451_v44 = vmax.f32 %v419_v25, 0.0  ;;  %v452_v51 = vmax.f32 %v420_v26, 0.0 }
 0x180   : > { %v812_v56 = vpack.c.bf16 %v422_v2, %v421_v29  ;;  %v817_v62 = vpack.c.bf16 %v424_v4, %v423_v3  ;;  %v822_v40 = vpack.c.bf16 %v426_v6, %v425_v31  ;;  %v827_v7 = vpack.c.bf16 %v428_v34, %v427_v8 }
 0x181   : > { %v832_v17 = vpack.c.bf16 %v430_v15, %v429_v11  ;;  %v837_v24 = vpack.c.bf16 %v432_v23, %v431_v19  ;;  %v842_v30 = vpack.c.bf16 %v434_v32, %v433_v28  ;;  %v847_v42 = vpack.c.bf16 %v436_v37, %v435_v35 }
 0x182   : > { %813 = vst [vmem:[%s1332_s17] sm:$0xff] %v812_v56   ;;  %904 = vst [vmem:[%s1332_s17 + $0x8] sm:$0xff] %v817_v62   ;;  %v852_v43 = vpack.c.bf16 %v438_v46, %v437_v41  ;;  %v857_v45 = vpack.c.bf16 %v440_v55, %v439_v50  ;;  %v862_v47 = vpack.c.bf16 %v442_v0, %v441_v59 }
 0x183   : > { %905 = vst [vmem:[%s1332_s17 + $0x10] sm:$0xff] %v822_v40   ;;  %906 = vst [vmem:[%s1332_s17 + $0x18] sm:$0xff] %v827_v7   ;;  %v867_v48 = vpack.c.bf16 %v444_v16, %v443_v9  ;;  %v872_v49 = vpack.c.bf16 %v446_v21, %v445_v36  ;;  %v877_v52 = vpack.c.bf16 %v448_v38, %v447_v27 }
 0x184   : > { %907 = vst [vmem:[%s1332_s17 + $0x20] sm:$0xff] %v832_v17   ;;  %908 = vst [vmem:[%s1332_s17 + $0x28] sm:$0xff] %v837_v24   ;;  %v882_v53 = vpack.c.bf16 %v450_v39, %v449_v33  ;;  %v887_v54 = vpack.c.bf16 %v452_v51, %v451_v44 }
 0x185   : > { %909 = vst [vmem:[%s1332_s17 + $0x30] sm:$0xff] %v842_v30   ;;  %910 = vst [vmem:[%s1332_s17 + $0x38] sm:$0xff] %v847_v42  }
 0x186   : > { %911 = vst [vmem:[%s1332_s17 + $0x40] sm:$0xff] %v852_v43   ;;  %912 = vst [vmem:[%s1332_s17 + $0x48] sm:$0xff] %v857_v45  }
 0x187   : > { %913 = vst [vmem:[%s1332_s17 + $0x50] sm:$0xff] %v862_v47   ;;  %914 = vst [vmem:[%s1332_s17 + $0x58] sm:$0xff] %v867_v48  }
 0x188   : > { %915 = vst [vmem:[%s1332_s17 + $0x60] sm:$0xff] %v872_v49   ;;  %916 = vst [vmem:[%s1332_s17 + $0x68] sm:$0xff] %v877_v52  }
 0x189   : > { %917 = vst [vmem:[%s1332_s17 + $0x70] sm:$0xff] %v882_v53   ;;  %918 = vst [vmem:[%s1332_s17 + $0x78] sm:$0xff] %v887_v54  }
 0x18a PF: > { %s11_s6 = sadd.s32 1, %s938_s6  }
 0x18b   : > { %p8_p4 = scmp.ge.s32.totalorder %s11_s6, 4  }
 0x18d   :  { %10 = sbr.rel (!%p8_p4) target bundleno = 1 (0x1), region = 54 }

</bundles_post_ra>
